<compile_context>
chip_gen: v6e
topology: v6e:2x2x1
jax: 0.10.0
libtpu: 0.0.40
codegen_flags: <defaults>
</compile_context>

<pallas_src>
import functools

import jax
import jax.numpy as jnp
from jax.experimental import pallas as pl
from jax.experimental.pallas import tpu as pltpu

_LANE_CHOICES = (2048, 1024, 512, 256, 128)
_MIN_PALLAS_ELEMS = 32 * 1024      # below this, pallas_call overhead dominates
_MIN_GRID_STEPS = 4                # pipeline steady state; kept even for v7x balance


def _convert_kernel(x_ref, o_ref, *, scale, out_dtype):
    # Elementwise hot path: load tile, scale in f32, cast to target dtype.
    x = x_ref[...].astype(jnp.float32)
    o_ref[...] = (x * jnp.float32(scale)).astype(out_dtype)


def _round_down(x, m):
    return (x // m) * m


def _round_up(x, m):
    return ((x + m - 1) // m) * m


def _vmem_tuning():
    """(tile_budget_bytes, vmem_limit_bytes), gated per TPU generation."""
    cap = None
    try:
        cap = pltpu.get_tpu_info().vmem_capacity_bytes
    except Exception:
        cap = None
    if cap is not None and cap >= (96 << 20):
        # v5e / v6e: 128 MiB physical VMEM -> bigger tiles, fewer grid steps.
        return 20 << 20, 48 << 20
    # v7x (64 MiB per TensorCore) or unknown: stay under the 32 MiB scoped default.
    return 12 << 20, 32 << 20


def _to_2d(image):
    """Metadata-only reshape to a lane-dense (rows, lanes) 2-D view, or None.

    Only requires image.size % lanes == 0 (Pallas masks a partial tail
    row-block). Returns None for ragged sizes -> caller uses fused XLA instead.
    """
    n = image.size
    for lanes in _LANE_CHOICES:
        if n % lanes == 0:
            return image.reshape(n // lanes, lanes)
    return None


def _pick_block_rows(rows, lanes, in_bytes, out_bytes, tile_budget):
    """Balanced row-tiling from a VMEM budget (double-buffered in + out only)."""
    # 8-bit data packs natively as (32,128); keep 32-aligned blocks in that case.
    row_align = 32 if min(in_bytes, out_bytes) == 1 else 8
    per_row_bytes = lanes * 2 * (in_bytes + out_bytes)
    budget_rows = max(row_align, _round_down(tile_budget // per_row_bytes, row_align))

    # Choose the step count first: enough to respect the budget, at least
    # _MIN_GRID_STEPS for pipeline steady state, and even so a 2-TC v7x chip
    # gets a balanced split under dimension_semantics=("parallel",).
    n_steps = max(pl.cdiv(rows, budget_rows), _MIN_GRID_STEPS)
    if n_steps % 2:
        n_steps += 1

    block_rows = _round_up(pl.cdiv(rows, n_steps), row_align)
    block_rows = min(block_rows, budget_rows)
    block_rows = max(block_rows, row_align)
    if block_rows >= rows:
        # Single block equal to the full array dim (always a legal block shape).
        block_rows = rows
    return block_rows


def convert_image_dtype(image, dtype, target=None):
    """JAX/Pallas equivalent of ConvertImageDtype.forward."""
    in_dtype = jnp.dtype(image.dtype)
    out_dtype = jnp.dtype(dtype)

    if in_dtype == out_dtype:
        return image, target

    in_is_float = jnp.issubdtype(in_dtype, jnp.floating)
    out_is_float = jnp.issubdtype(out_dtype, jnp.floating)

    if in_is_float and out_is_float:
        # Pure cast: XLA's fused convert is already at HBM roofline, skip Pallas.
        return image.astype(out_dtype), target

    if (not in_is_float) and (not out_is_float):
        # int -> int: torchvision-style integer rescale. Fused XLA elementwise is
        # already HBM-roofline; not worth a dedicated Pallas path.
        input_max = jnp.iinfo(in_dtype).max
        output_max = jnp.iinfo(out_dtype).max
        if input_max > output_max:
            factor = (input_max + 1) // (output_max + 1)
            out = (image // in_dtype.type(factor)).astype(out_dtype)
        else:
            factor = (output_max + 1) // (input_max + 1)
            out = image.astype(out_dtype) * out_dtype.type(factor)
        return out, target

    if (not in_is_float) and out_is_float:
        # int -> float: divide by max of input integer type.
        scale = 1.0 / float(jnp.iinfo(in_dtype).max)
    else:
        # float -> int: multiply by (max + 1 - eps).
        # TODO(synk): out-of-range / NaN inputs and 32/64-bit int targets follow
        # XLA convert/saturation semantics, which may differ from torch's .to().
        eps = 1e-3
        scale = float(jnp.iinfo(out_dtype).max) + 1.0 - eps

    def _xla_fallback():
        return (image.astype(jnp.float32) * jnp.float32(scale)).astype(out_dtype)

    # Tiny images: per-call overhead dominates, just use XLA.
    if image.size < _MIN_PALLAS_ELEMS:
        return _xla_fallback(), target

    x2d = _to_2d(image)
    if x2d is None:
        # Ragged size (e.g. odd-width detection images): fused XLA convert+mul is
        # 1 read + 1 write at roofline; cheaper than pad + pallas + slice.
        return _xla_fallback(), target

    rows, lanes = x2d.shape
    in_bytes = in_dtype.itemsize
    out_bytes = out_dtype.itemsize
    tile_budget, vmem_limit = _vmem_tuning()
    block_rows = _pick_block_rows(rows, lanes, in_bytes, out_bytes, tile_budget)
    grid = (pl.cdiv(rows, block_rows),)

    kernel = functools.partial(_convert_kernel, scale=scale, out_dtype=out_dtype)
    n_elems = rows * lanes

    out2d = pl.pallas_call(
        kernel,
        out_shape=jax.ShapeDtypeStruct((rows, lanes), out_dtype),
        grid_spec=pltpu.PrefetchScalarGridSpec(
            num_scalar_prefetch=0,
            grid=grid,
            in_specs=[pl.BlockSpec((block_rows, lanes), lambda i: (i, 0))],
            out_specs=pl.BlockSpec((block_rows, lanes), lambda i: (i, 0)),
        ),
        compiler_params=pltpu.CompilerParams(
            dimension_semantics=("parallel",),
            vmem_limit_bytes=vmem_limit,
        ),
        cost_estimate=pl.CostEstimate(
            flops=n_elems,
            transcendentals=0,
            bytes_accessed=n_elems * (in_bytes + out_bytes),
        ),
    )(x2d)

    return out2d.reshape(image.shape), target


class ConvertImageDtype:
    """Mirror of the PyTorch module: holds the target dtype, converts on call."""

    def __init__(self, dtype):
        self.dtype = dtype

    def __call__(self, image, target=None):
        return convert_image_dtype(image, self.dtype, target)


if __name__ == "__main__":
    key = jax.random.PRNGKey(0)
    k1, k2, k3 = jax.random.split(key, 3)

    # uint8 NCHW image large enough to exercise the Pallas path
    # (131072 elems -> lanes=2048, rows=64, 32-row blocks -> 2-step grid).
    N, C, H, W = 2, 4, 128, 128
    image_u8 = jax.random.randint(k1, (N, C, H, W), 0, 256, dtype=jnp.int32).astype(
        jnp.uint8
    )
    target = {"labels": jnp.arange(3, dtype=jnp.int32)}

    mod = ConvertImageDtype(jnp.float32)
    out, tgt = mod(image_u8, target)
    out = jax.block_until_ready(out)

    ref = image_u8.astype(jnp.float32) / 255.0
    assert out.dtype == jnp.float32
    assert out.shape == (N, C, H, W)
    assert jnp.allclose(out, ref, atol=1e-6)
    assert tgt is target

    # Tiny image: small-input fast path (no pallas_call), same semantics.
    tiny_u8 = jax.random.randint(k2, (2, 4, 16, 16), 0, 256, dtype=jnp.int32).astype(
        jnp.uint8
    )
    out_tiny, _ = mod(tiny_u8)
    out_tiny = jax.block_until_ready(out_tiny)
    assert jnp.allclose(out_tiny, tiny_u8.astype(jnp.float32) / 255.0, atol=1e-6)

    # Ragged size (not a multiple of 128): fused XLA fallback, same semantics.
    ragged_u8 = jax.random.randint(k3, (3, 100, 131), 0, 256, dtype=jnp.int32).astype(
        jnp.uint8
    )
    out_rag, _ = mod(ragged_u8)
    out_rag = jax.block_until_ready(out_rag)
    assert out_rag.shape == (3, 100, 131)
    assert jnp.allclose(out_rag, ragged_u8.astype(jnp.float32) / 255.0, atol=1e-6)

    # float -> float pure cast path (skips Pallas entirely).
    img_f32 = jax.random.uniform(k1, (N, C, H, W), dtype=jnp.float32)
    out_bf16, _ = ConvertImageDtype(jnp.bfloat16)(img_f32)
    out_bf16 = jax.block_until_ready(out_bf16)
    assert out_bf16.dtype == jnp.bfloat16
    assert jnp.allclose(
        out_bf16.astype(jnp.float32), img_f32.astype(jnp.bfloat16).astype(jnp.float32)
    )

    # float -> uint8 path through the Pallas kernel.
    out_u8, _ = ConvertImageDtype(jnp.uint8)(img_f32)
    out_u8 = jax.block_until_ready(out_u8)
    ref_u8 = (img_f32 * jnp.float32(255.0 + 1.0 - 1e-3)).astype(jnp.uint8)
    assert out_u8.dtype == jnp.uint8
    assert jnp.all(
        jnp.abs(out_u8.astype(jnp.int32) - ref_u8.astype(jnp.int32)) <= 1
    )

    # int -> int path (torchvision integer rescale semantics), uint8 -> int16.
    out_i16, _ = ConvertImageDtype(jnp.int16)(image_u8)
    out_i16 = jax.block_until_ready(out_i16)
    ref_i16 = image_u8.astype(jnp.int16) * jnp.int16((32767 + 1) // 256)
    assert out_i16.dtype == jnp.int16
    assert jnp.array_equal(out_i16, ref_i16)

    print("KERNEL_OK")
</pallas_src>

<mosaic_0001>
module attributes {stable_mosaic.version = 11 : i64} {
  func.func @_convert_kernel(%arg0: i32, %arg1: memref<32x2048xi8, #tpu.memory_space<vmem>>, %arg2: memref<32x2048xf32, #tpu.memory_space<vmem>>) attributes {dimension_semantics = [#tpu.dimension_semantics<parallel>], iteration_bounds = array<i64: 2>, scalar_prefetch = 0 : i64, scratch_operands = 0 : i64, tpu.core_type = #tpu.core_type<tc>, window_params = [{transform_indices = @transform_0, window_bounds = array<i64: 32, 2048>}, {transform_indices = @transform_1, window_bounds = array<i64: 32, 2048>}]} {
    %c0 = arith.constant 0 : index
    %c0_0 = arith.constant 0 : index
    %0 = vector.load %arg1[%c0, %c0_0] : memref<32x2048xi8, #tpu.memory_space<vmem>>, vector<32x2048xi8>
    %1 = arith.uitofp %0 : vector<32x2048xi8> to vector<32x2048xf32>
    %cst = arith.constant 0.00392156886 : f32
    %2 = vector.broadcast %cst : f32 to vector<32x2048xf32>
    %3 = arith.mulf %1, %2 : vector<32x2048xf32>
    %c0_1 = arith.constant 0 : index
    %c0_2 = arith.constant 0 : index
    %4 = vector.load %arg2[%c0_1, %c0_2] : memref<32x2048xf32, #tpu.memory_space<vmem>>, vector<32x2048xf32>
    tpu.vector_store %arg2[%c0_1, %c0_2], %3 {strides = array<i32>} : memref<32x2048xf32, #tpu.memory_space<vmem>>, vector<32x2048xf32>,
    return
  }
  func.func @transform_0(%arg0: i32) -> (i32, i32) {
    %c0_i32 = arith.constant 0 : i32
    %c0_i32_0 = arith.constant 0 : i32
    return %arg0, %c0_i32 : i32, i32
  }
  func.func @transform_1(%arg0: i32) -> (i32, i32) {
    %c0_i32 = arith.constant 0 : i32
    %c0_i32_0 = arith.constant 0 : i32
    return %arg0, %c0_i32 : i32, i32
  }
}

</mosaic_0001>

<bundles_post_ra>
// kernel: tpu_custom_call.1
= control target key start
LH: loop header
LB: loop body
LE: loop exit
PB: predicated region body
PF: predicated region fallthrough
CT: control target
= control target key end

     0   :  { %6 = vsyncpa [#allocation3], 0  ;;  %s1075_s0 = inlined_call_operand.hbm [shape: u8[64,2048], index: 0, kind: input, shape index: {}]   ;;  %s1076_s1 = inlined_call_operand.hbm [shape: f32[64,2048], index: 1, kind: output, shape index: {}]  }
   0x1   :  { %8 = vsyncpa [#allocation3 + $0x1], 0 }
   0x2   :  { %9 = vsyncpa [#allocation4], 0 }
   0x3   :  { %11 = vsyncpa [#allocation4 + $0x1], 0  ;;  %s732_s6 = smov 0   ;;  %s734_s7 = smov 0  }
   0x4   :  { %s736_s8 = smov 0   ;;  %s738_s9 = smov 0  }
   0x5 LB: > { %s753_s10 = sadd.s32 4294967295, %s716_s9   ;;  %s558_s11 = sadd.s32 4294967294, %s716_s9   ;;  %s716_s9 = sphi %s738_s9, %s1093_s9   ;;  %s712_s8 = sphi %s736_s8, %s1092_s8   ;;  %s708_s7 = sphi %s734_s7, %s1091_s7   ;;  %s704_s6 = sphi %s732_s6, %s1090_s6  }
   0x6   : > { %s757_s12 = sadd.s32 1, %s716_s9   ;;  %s24_s13 = sadd.s32 1, %s712_s8 }
   0x7   : > { %s21_s14 = ssub.s32 %s716_s9, %s757_s12  ;;  %p31_p0 = scmp.ne.s32.totalorder %s712_s8, %s708_s7 }
   0x8   : > { %p22_p1 = scmp.eq.s32.totalorder %s21_s14, 0  ;;  %p32_p2 = scmp.eq.s32.totalorder %s716_s9, 0 }
   0x9   : > { %p37_p3 = scmp.ne.s32.totalorder %s708_s7, %s704_s6  ;;  %p38_p4 = scmp.eq.s32.totalorder %s753_s10, 0 }
   0xa   : > { %s769_s15 = scalar_select %p22_p1, %s712_s8, %s24_s13  }
   0xb   : > { %p771_p5 = por %p32_p2, %p31_p0  ;;  %p775_p6 = por %p38_p4, %p37_p3 }
   0xc   : > { %p61_p7 = scmp.eq.s32.totalorder %s753_s10, 1  ;;  %p67_p8 = scmp.eq.s32.totalorder %s558_s11, 1 }
   0xd   : > { %s1080_s17 = scalar_select %p775_p6, 1, 0 }
   0xe   : > { %p588_p10 = scmp.lt.s32.totalorder %s716_s9, 2  ;;  %p782_p11 = por %p61_p7, %p31_p0 }
   0xf   : > { %p786_p12 = por %p67_p8, %p37_p3  ;;  %s87_s20 = sand.u32 1, %s712_s8  }
  0x10   : > { %s1081_s18 = scalar_select %p782_p11, 1, 0 }
  0x11   : > { %s1082_s19 = scalar_select %p786_p12, 1, 0 }
  0x12   : > { %s573_s21 = sshll.u32 %s716_s9, 11  ;;  %s561_s22 = sshll.u32 %s87_s20, 7 }
  0x13   : > { %s795_s25 = scalar_lea.hbm %s1075_s0, %s573_s21  ;;  %s91_s26 = scalar_lea.vmem [#allocation2], %s561_s22 }
  0x14   : > { %s99_s27 = sshll.u32 %s91_s26, 4  ;;  %p799_p13 = pnand %p588_p10, %p771_p5  ;;  %s803_s27 = int_to_ptr.vmem [resolvable:$true] %s99_s27 }
  0x15   : > { %s88_s29 = scalar_lea.sflag [#allocation3], %s87_s20  ;;  %s624_s30 = scalar_lea.hbm %s795_s25, 2048 }
  0x16   : > { %p625_p2 = scmp.ne.s32.totalorder %s795_s25, %s624_s30  ;;  %p626_p3 = pneg %p799_p13 }
  0x17   : > { %s629_s4 = scalar_lea.hbm %s1075_s0, 4096  ;;  %p630_p5 = scmp.lt.s32.totalorder %s795_s25, %s1075_s0 }
  0x18   : > { %p627_p4 = pnand %p626_p3, %p625_p2  ;;  %p631_p8 = scmp.lt.s32.totalorder %s629_s4, %s624_s30 }
  0x1a   : > { %p628_p7 = pneg %p627_p4  ;;  %p632_p10 = por %p631_p8, %p630_p5 }
  0x1c   : > { %p633_p9 = pnand %p632_p10, %p628_p7 }
  0x1e   : > { %636 = shalt.err (!%p633_p9)
}
  0x1f   : > { %s637_s13 = scalar_lea.vmem %s803_s27, 2048  ;;  %s718_s14 = smov [#allocation2]  }
  0x20   : > { %p638_p0 = scmp.ne.s32.totalorder %s803_s27, %s637_s13  ;;  %s642_s16 = sshll.u32 %s718_s14, 4  ;;  %s643_s16 = int_to_ptr.vmem [resolvable:$false] %s642_s16 }
  0x21   : > { %s644_s20 = scalar_lea.vmem %s643_s16, 4096  ;;  %p645_p4 = scmp.lt.s32.totalorder %s803_s27, %s643_s16 }
  0x22   : > { %p640_p1 = pnand %p638_p0, %p626_p3  ;;  %p646_p12 = scmp.lt.s32.totalorder %s644_s20, %s637_s13 }
  0x24   : > { %p641_p2 = pneg %p640_p1  ;;  %p647_p11 = por %p646_p12, %p645_p4 }
  0x26   : > { %p648_p6 = pnand %p647_p11, %p641_p2 }
  0x28   : > { %651 = shalt.err (!%p648_p6)
}
  0x29   : > { %583 = dma.hbm_to_vmem [thread:$0]  (!%p799_p13), %s795_s25, 2048, %s803_s27, %s88_s29  }
  0x2a   : > { %p1084_p9 = scmp.lt.s32.totalorder %s716_s9, 3  ;;  %p1085_p7 = scmp.ge.s32.totalorder %s716_s9, 1 }
  0x2c   : > { %p105_p0 = pnand %p1085_p7, %p1084_p9 }
  0x2d   : > { %s830_s21 = sand.u32 (!%p105_p0), 1, %s708_s7   ;;  %p1086_p6 = scmp.ne.s32.totalorder (!%p105_p0), %s1080_s17, 0 }
  0x2e   : > { %108 = sbr.rel (%p105_p0) target bundleno = 134 (0x86), region = 24  ;;  %s565_s22 = sshll.u32 (!%p105_p0), %s830_s21, 7 }
  0x2f   : > { %s111_s23 = scalar_lea.sflag (!%p105_p0), [#allocation3], %s830_s21  ;;  %s834_s24 = scalar_lea.vmem (!%p105_p0), [#allocation2], %s565_s22 }
  0x33   : > { %695 = dma.done.wait (%p1086_p6), %s111_s23, 2048  }
  0x34   : > { %697 = vsyncadd (%p1086_p6), %s111_s23, 4294965248  ;;  %v841_v0 = vld [vmem:[%s834_s24] sm:$0xff]  ;;  %v844_v1 = vld [vmem:[%s834_s24 + $0x8] sm:$0xff]  ;;  %s566_s17 = sshll.u32 %s830_s21, 9  ;;  %s575_s26 = sshll.u32 %s753_s10, 13 }
  0x35   : > { %v847_v2 = vld [vmem:[%s834_s24 + $0x10] sm:$0xff]  ;;  %v150_v3 = vunpack.c.0.s8 %v841_v0  ;;  %v151_v4 = vunpack.c.0.s8 %v844_v1  ;;  %v853_v6 = vld [vmem:[%s834_s24 + $0x18] sm:$0xff]  ;;  %v856_v7 = vld [vmem:[%s834_s24 + $0x20] sm:$0xff]  ;;  %v166_v9 = vunpack.c.1.s8 %v841_v0  ;;  %v167_v15 = vunpack.c.1.s8 %v844_v1  ;;  %s898_s25 = scalar_lea.vmem [#allocation5], %s566_s17  ;;  %s1025_s10 = scalar_lea.hbm %s1076_s1, %s575_s26 }
  0x36   : > { %v152_v5 = vunpack.c.0.s8 %v847_v2  ;;  %v859_v8 = vld [vmem:[%s834_s24 + $0x28] sm:$0xff]  ;;  %v153_v10 = vunpack.c.0.s8 %v853_v6  ;;  %v154_v11 = vunpack.c.0.s8 %v856_v7  ;;  %v866_v13 = vld [vmem:[%s834_s24 + $0x30] sm:$0xff]  ;;  %v869_v14 = vld [vmem:[%s834_s24 + $0x38] sm:$0xff]  ;;  %s485_s27 = sshll.u32 %s898_s25, 4  ;;  %s471_s30 = scalar_lea.sflag [#allocation4], %s830_s21  ;;  %s1027_s27 = int_to_ptr.vmem [resolvable:$true] %s485_s27 }
  0x37   : > { %v155_v12 = vunpack.c.0.s8 %v859_v8  ;;  %v214_v16 = vand.u32 255, %v150_v3  ;;  %v215_v17 = vand.u32 255, %v151_v4  ;;  %v156_v19 = vunpack.c.0.s8 %v866_v13  ;;  %v876_v24 = vld [vmem:[%s834_s24 + $0x40] sm:$0xff]  ;;  %v879_v29 = vld [vmem:[%s834_s24 + $0x48] sm:$0xff]  ;;  %v882_v30 = vld [vmem:[%s834_s24 + $0x50] sm:$0xff]  ;;  %s652_s2 = scalar_lea.vmem %s1027_s27, 8192 }
  0x38   : > { %v216_v18 = vand.u32 255, %v152_v5  ;;  %v217_v20 = vand.u32 255, %v153_v10  ;;  %v218_v21 = vand.u32 255, %v154_v11  ;;  %v157_v23 = vunpack.c.0.s8 %v869_v14  ;;  %v885_v31 = vld [vmem:[%s834_s24 + $0x58] sm:$0xff]  ;;  %v888_v36 = vld [vmem:[%s834_s24 + $0x60] sm:$0xff]  ;;  %v891_v37 = vld [vmem:[%s834_s24 + $0x68] sm:$0xff]  ;;  %p653_p11 = scmp.ne.s32.totalorder %s1027_s27, %s652_s2 }
  0x39   : > { %v219_v22 = vand.u32 255, %v155_v12  ;;  %v278_v25 = vcvt.s32.f32 %v214_v16  ;;  %v279_v26 = vcvt.s32.f32 %v215_v17  ;;  %v220_v28 = vand.u32 255, %v156_v19  ;;  %v894_v38 = vld [vmem:[%s834_s24 + $0x70] sm:$0xff]  ;;  %v907_v51 = vld [vmem:[%s834_s24 + $0x78] sm:$0xff]  ;;  %p1087_p12 = scmp.ne.s32.totalorder %s1081_s18, 0  ;;  %s719_s3 = smov [#allocation5]  }
  0x3a   : > { %v280_v27 = vcvt.s32.f32 %v216_v18  ;;  %v281_v32 = vcvt.s32.f32 %v217_v20  ;;  %v282_v33 = vcvt.s32.f32 %v218_v21  ;;  %v221_v35 = vand.u32 255, %v157_v23  ;;  %s656_s4 = sshll.u32 %s719_s3, 4  ;;  %s657_s4 = int_to_ptr.vmem [resolvable:$false] %s656_s4 }
  0x3b   : > { %v283_v34 = vcvt.s32.f32 %v219_v22  ;;  %v342_v39 = vmul.f32 0.003921569, %v278_v25  ;;  %v343_v40 = vmul.f32 0.003921569, %v279_v26  ;;  %v284_v42 = vcvt.s32.f32 %v220_v28  ;;  %p654_p13 = pnand %p653_p11, %p1087_p12  ;;  %s658_s5 = scalar_lea.vmem %s657_s4, 16384 }
  0x3c   : > { %v344_v41 = vmul.f32 0.003921569, %v280_v27  ;;  %v345_v43 = vmul.f32 0.003921569, %v281_v32  ;;  %v346_v44 = vmul.f32 0.003921569, %v282_v33  ;;  %v285_v46 = vcvt.s32.f32 %v221_v35  ;;  %p659_p3 = scmp.lt.s32.totalorder %s1027_s27, %s657_s4  ;;  %p660_p5 = scmp.lt.s32.totalorder %s658_s5, %s652_s2 }
  0x3d   : > { %v347_v45 = vmul.f32 0.003921569, %v283_v34  ;;  %406 = vst [vmem:[%s898_s25] sm:$0xff] %v342_v39  ;;  %407 = vst [vmem:[%s898_s25 + $0x8] sm:$0xff] %v343_v40  ;;  %v348_v47 = vmul.f32 0.003921569, %v284_v42  ;;  %v158_v48 = vunpack.c.0.s8 %v876_v24  ;;  %v159_v49 = vunpack.c.0.s8 %v879_v29  ;;  %p655_p1 = pneg %p654_p13 }
  0x3e   : > { %408 = vst [vmem:[%s898_s25 + $0x10] sm:$0xff] %v344_v41  ;;  %v160_v50 = vunpack.c.0.s8 %v882_v30  ;;  %409 = vst [vmem:[%s898_s25 + $0x18] sm:$0xff] %v345_v43  ;;  %v349_v52 = vmul.f32 0.003921569, %v285_v46  ;;  %v161_v53 = vunpack.c.0.s8 %v885_v31  ;;  %v162_v54 = vunpack.c.0.s8 %v888_v36  ;;  %p661_p8 = por %p660_p5, %p659_p3 }
  0x3f   : > { %410 = vst [vmem:[%s898_s25 + $0x20] sm:$0xff] %v346_v44  ;;  %411 = vst [vmem:[%s898_s25 + $0x28] sm:$0xff] %v347_v45  ;;  %v163_v55 = vunpack.c.0.s8 %v891_v37  ;;  %v222_v56 = vand.u32 255, %v158_v48  ;;  %v223_v57 = vand.u32 255, %v159_v49  ;;  %v164_v59 = vunpack.c.0.s8 %v894_v38 }
  0x40   : > { %412 = vst [vmem:[%s898_s25 + $0x30] sm:$0xff] %v348_v47  ;;  %v224_v58 = vand.u32 255, %v160_v50  ;;  %413 = vst [vmem:[%s898_s25 + $0x38] sm:$0xff] %v349_v52  ;;  %v225_v60 = vand.u32 255, %v161_v53  ;;  %v226_v61 = vand.u32 255, %v162_v54  ;;  %v165_v63 = vunpack.c.0.s8 %v907_v51  ;;  %p662_p10 = pnand %p661_p8, %p655_p1 }
  0x41   : > { %v227_v62 = vand.u32 255, %v163_v55  ;;  %v286_v3 = vcvt.s32.f32 %v222_v56  ;;  %v287_v4 = vcvt.s32.f32 %v223_v57  ;;  %v228_v10 = vand.u32 255, %v164_v59 }
  0x42   : > { %v288_v5 = vcvt.s32.f32 %v224_v58  ;;  %v289_v11 = vcvt.s32.f32 %v225_v60  ;;  %v290_v12 = vcvt.s32.f32 %v226_v61  ;;  %v229_v17 = vand.u32 255, %v165_v63 }
  0x43   : > { %v291_v16 = vcvt.s32.f32 %v227_v62  ;;  %v350_v18 = vmul.f32 0.003921569, %v286_v3  ;;  %v351_v19 = vmul.f32 0.003921569, %v287_v4  ;;  %v292_v21 = vcvt.s32.f32 %v228_v10 }
  0x44   : > { %v352_v20 = vmul.f32 0.003921569, %v288_v5  ;;  %v353_v22 = vmul.f32 0.003921569, %v289_v11  ;;  %v354_v23 = vmul.f32 0.003921569, %v290_v12  ;;  %v293_v26 = vcvt.s32.f32 %v229_v17 }
  0x45   : > { %v355_v25 = vmul.f32 0.003921569, %v291_v16  ;;  %414 = vst [vmem:[%s898_s25 + $0x40] sm:$0xff] %v350_v18  ;;  %415 = vst [vmem:[%s898_s25 + $0x48] sm:$0xff] %v351_v19  ;;  %v356_v27 = vmul.f32 0.003921569, %v292_v21  ;;  %v168_v33 = vunpack.c.1.s8 %v847_v2  ;;  %v169_v35 = vunpack.c.1.s8 %v853_v6 }
  0x46   : > { %416 = vst [vmem:[%s898_s25 + $0x50] sm:$0xff] %v352_v20  ;;  %v230_v28 = vand.u32 255, %v166_v9  ;;  %v231_v32 = vand.u32 255, %v167_v15  ;;  %417 = vst [vmem:[%s898_s25 + $0x58] sm:$0xff] %v353_v22  ;;  %v357_v34 = vmul.f32 0.003921569, %v293_v26  ;;  %v170_v39 = vunpack.c.1.s8 %v856_v7 }
  0x47   : > { %418 = vst [vmem:[%s898_s25 + $0x60] sm:$0xff] %v354_v23  ;;  %419 = vst [vmem:[%s898_s25 + $0x68] sm:$0xff] %v355_v25  ;;  %v171_v40 = vunpack.c.1.s8 %v859_v8  ;;  %v232_v9 = vand.u32 255, %v168_v33  ;;  %v172_v15 = vunpack.c.1.s8 %v866_v13  ;;  %v233_v43 = vand.u32 255, %v169_v35 }
  0x48   : > { %420 = vst [vmem:[%s898_s25 + $0x70] sm:$0xff] %v356_v27  ;;  %v294_v41 = vcvt.s32.f32 %v230_v28  ;;  %v295_v42 = vcvt.s32.f32 %v231_v32  ;;  %421 = vst [vmem:[%s898_s25 + $0x78] sm:$0xff] %v357_v34  ;;  %v234_v44 = vand.u32 255, %v170_v39  ;;  %v173_v46 = vunpack.c.1.s8 %v869_v14 }
  0x49   : > { %v235_v45 = vand.u32 255, %v171_v40  ;;  %v296_v49 = vcvt.s32.f32 %v232_v9  ;;  %v236_v50 = vand.u32 255, %v172_v15  ;;  %v297_v52 = vcvt.s32.f32 %v233_v43 }
  0x4a   : > { %v358_v47 = vmul.f32 0.003921569, %v294_v41  ;;  %v359_v48 = vmul.f32 0.003921569, %v295_v42  ;;  %v298_v53 = vcvt.s32.f32 %v234_v44  ;;  %v237_v55 = vand.u32 255, %v173_v46 }
  0x4b   : > { %v299_v54 = vcvt.s32.f32 %v235_v45  ;;  %v360_v56 = vmul.f32 0.003921569, %v296_v49  ;;  %v300_v57 = vcvt.s32.f32 %v236_v50  ;;  %v174_v58 = vunpack.c.1.s8 %v876_v24 }
  0x4c   : > { %422 = vst [vmem:[%s898_s25 + $0x80] sm:$0xff] %v358_v47  ;;  %423 = vst [vmem:[%s898_s25 + $0x88] sm:$0xff] %v359_v48  ;;  %v175_v59 = vunpack.c.1.s8 %v879_v29  ;;  %v361_v60 = vmul.f32 0.003921569, %v297_v52  ;;  %v362_v61 = vmul.f32 0.003921569, %v298_v53  ;;  %v301_v63 = vcvt.s32.f32 %v237_v55 }
  0x4d   : > { %v363_v62 = vmul.f32 0.003921569, %v299_v54  ;;  %424 = vst [vmem:[%s898_s25 + $0x90] sm:$0xff] %v360_v56  ;;  %v364_v3 = vmul.f32 0.003921569, %v300_v57  ;;  %v238_v4 = vand.u32 255, %v174_v58  ;;  %v176_v10 = vunpack.c.1.s8 %v882_v30 }
  0x4e   : > { %v239_v5 = vand.u32 255, %v175_v59  ;;  %425 = vst [vmem:[%s898_s25 + $0x98] sm:$0xff] %v361_v60  ;;  %426 = vst [vmem:[%s898_s25 + $0xa0] sm:$0xff] %v362_v61  ;;  %v365_v11 = vmul.f32 0.003921569, %v301_v63  ;;  %v177_v12 = vunpack.c.1.s8 %v885_v31  ;;  %v178_v16 = vunpack.c.1.s8 %v888_v36 }
  0x4f   : > { %427 = vst [vmem:[%s898_s25 + $0xa8] sm:$0xff] %v363_v62  ;;  %v179_v17 = vunpack.c.1.s8 %v891_v37  ;;  %428 = vst [vmem:[%s898_s25 + $0xb0] sm:$0xff] %v364_v3  ;;  %v302_v18 = vcvt.s32.f32 %v238_v4  ;;  %v240_v20 = vand.u32 255, %v176_v10  ;;  %v180_v21 = vunpack.c.1.s8 %v894_v38 }
  0x50   : > { %v303_v19 = vcvt.s32.f32 %v239_v5  ;;  %429 = vst [vmem:[%s898_s25 + $0xb8] sm:$0xff] %v365_v11  ;;  %v241_v22 = vand.u32 255, %v177_v12  ;;  %v242_v23 = vand.u32 255, %v178_v16  ;;  %v181_v26 = vunpack.c.1.s8 %v907_v51 }
  0x51   : > { %v243_v25 = vand.u32 255, %v179_v17  ;;  %v366_v27 = vmul.f32 0.003921569, %v302_v18  ;;  %v304_v32 = vcvt.s32.f32 %v240_v20  ;;  %v244_v33 = vand.u32 255, %v180_v21 }
  0x52   : > { %v367_v28 = vmul.f32 0.003921569, %v303_v19  ;;  %v305_v34 = vcvt.s32.f32 %v241_v22  ;;  %v306_v35 = vcvt.s32.f32 %v242_v23  ;;  %v245_v40 = vand.u32 255, %v181_v26 }
  0x53   : > { %v307_v39 = vcvt.s32.f32 %v243_v25  ;;  %430 = vst [vmem:[%s898_s25 + $0xc0] sm:$0xff] %v366_v27  ;;  %v368_v41 = vmul.f32 0.003921569, %v304_v32  ;;  %v308_v42 = vcvt.s32.f32 %v244_v33  ;;  %v182_v9 = vunpack.c.2.s8 %v841_v0 }
  0x54   : > { %431 = vst [vmem:[%s898_s25 + $0xc8] sm:$0xff] %v367_v28  ;;  %v183_v15 = vunpack.c.2.s8 %v844_v1  ;;  %v369_v43 = vmul.f32 0.003921569, %v305_v34  ;;  %v370_v44 = vmul.f32 0.003921569, %v306_v35  ;;  %v309_v46 = vcvt.s32.f32 %v245_v40 }
  0x55   : > { %v371_v45 = vmul.f32 0.003921569, %v307_v39  ;;  %432 = vst [vmem:[%s898_s25 + $0xd0] sm:$0xff] %v368_v41  ;;  %v372_v47 = vmul.f32 0.003921569, %v308_v42  ;;  %v246_v48 = vand.u32 255, %v182_v9  ;;  %v184_v50 = vunpack.c.2.s8 %v847_v2 }
  0x56   : > { %v247_v49 = vand.u32 255, %v183_v15  ;;  %433 = vst [vmem:[%s898_s25 + $0xd8] sm:$0xff] %v369_v43  ;;  %434 = vst [vmem:[%s898_s25 + $0xe0] sm:$0xff] %v370_v44  ;;  %v373_v52 = vmul.f32 0.003921569, %v309_v46  ;;  %v185_v53 = vunpack.c.2.s8 %v853_v6  ;;  %v186_v54 = vunpack.c.2.s8 %v856_v7 }
  0x57   : > { %435 = vst [vmem:[%s898_s25 + $0xe8] sm:$0xff] %v371_v45  ;;  %v187_v55 = vunpack.c.2.s8 %v859_v8  ;;  %436 = vst [vmem:[%s898_s25 + $0xf0] sm:$0xff] %v372_v47  ;;  %v310_v56 = vcvt.s32.f32 %v246_v48  ;;  %v248_v58 = vand.u32 255, %v184_v50  ;;  %v188_v59 = vunpack.c.2.s8 %v866_v13 }
  0x58   : > { %v311_v57 = vcvt.s32.f32 %v247_v49  ;;  %437 = vst [vmem:[%s898_s25 + $0xf8] sm:$0xff] %v373_v52  ;;  %v249_v60 = vand.u32 255, %v185_v53  ;;  %v250_v61 = vand.u32 255, %v186_v54  ;;  %v189_v63 = vunpack.c.2.s8 %v869_v14 }
  0x59   : > { %v251_v62 = vand.u32 255, %v187_v55  ;;  %v374_v3 = vmul.f32 0.003921569, %v310_v56  ;;  %v312_v5 = vcvt.s32.f32 %v248_v58  ;;  %v252_v10 = vand.u32 255, %v188_v59 }
  0x5a   : > { %v375_v4 = vmul.f32 0.003921569, %v311_v57  ;;  %v313_v11 = vcvt.s32.f32 %v249_v60  ;;  %v314_v12 = vcvt.s32.f32 %v250_v61  ;;  %v253_v17 = vand.u32 255, %v189_v63 }
  0x5b   : > { %v315_v16 = vcvt.s32.f32 %v251_v62  ;;  %438 = vst [vmem:[%s898_s25 + $0x100] sm:$0xff] %v374_v3  ;;  %v376_v18 = vmul.f32 0.003921569, %v312_v5  ;;  %v316_v19 = vcvt.s32.f32 %v252_v10  ;;  %v190_v20 = vunpack.c.2.s8 %v876_v24 }
  0x5c   : > { %439 = vst [vmem:[%s898_s25 + $0x108] sm:$0xff] %v375_v4  ;;  %v191_v21 = vunpack.c.2.s8 %v879_v29  ;;  %v377_v22 = vmul.f32 0.003921569, %v313_v11  ;;  %v378_v23 = vmul.f32 0.003921569, %v314_v12  ;;  %v317_v26 = vcvt.s32.f32 %v253_v17 }
  0x5d   : > { %v379_v25 = vmul.f32 0.003921569, %v315_v16  ;;  %440 = vst [vmem:[%s898_s25 + $0x110] sm:$0xff] %v376_v18  ;;  %v380_v27 = vmul.f32 0.003921569, %v316_v19  ;;  %v254_v28 = vand.u32 255, %v190_v20  ;;  %v192_v33 = vunpack.c.2.s8 %v882_v30 }
  0x5e   : > { %v255_v32 = vand.u32 255, %v191_v21  ;;  %441 = vst [vmem:[%s898_s25 + $0x118] sm:$0xff] %v377_v22  ;;  %442 = vst [vmem:[%s898_s25 + $0x120] sm:$0xff] %v378_v23  ;;  %v381_v34 = vmul.f32 0.003921569, %v317_v26  ;;  %v193_v35 = vunpack.c.2.s8 %v885_v31  ;;  %v194_v39 = vunpack.c.2.s8 %v888_v36 }
  0x5f   : > { %443 = vst [vmem:[%s898_s25 + $0x128] sm:$0xff] %v379_v25  ;;  %v195_v40 = vunpack.c.2.s8 %v891_v37  ;;  %444 = vst [vmem:[%s898_s25 + $0x130] sm:$0xff] %v380_v27  ;;  %v318_v41 = vcvt.s32.f32 %v254_v28  ;;  %v256_v9 = vand.u32 255, %v192_v33  ;;  %v196_v15 = vunpack.c.2.s8 %v894_v38 }
  0x60   : > { %v319_v42 = vcvt.s32.f32 %v255_v32  ;;  %445 = vst [vmem:[%s898_s25 + $0x138] sm:$0xff] %v381_v34  ;;  %v257_v43 = vand.u32 255, %v193_v35  ;;  %v258_v44 = vand.u32 255, %v194_v39  ;;  %v197_v46 = vunpack.c.2.s8 %v907_v51 }
  0x61   : > { %v259_v45 = vand.u32 255, %v195_v40  ;;  %v382_v47 = vmul.f32 0.003921569, %v318_v41  ;;  %v320_v49 = vcvt.s32.f32 %v256_v9  ;;  %v260_v50 = vand.u32 255, %v196_v15 }
  0x62   : > { %v383_v48 = vmul.f32 0.003921569, %v319_v42  ;;  %v321_v52 = vcvt.s32.f32 %v257_v43  ;;  %v322_v53 = vcvt.s32.f32 %v258_v44  ;;  %v261_v55 = vand.u32 255, %v197_v46 }
  0x63   : > { %v323_v54 = vcvt.s32.f32 %v259_v45  ;;  %446 = vst [vmem:[%s898_s25 + $0x140] sm:$0xff] %v382_v47  ;;  %v384_v56 = vmul.f32 0.003921569, %v320_v49  ;;  %v324_v57 = vcvt.s32.f32 %v260_v50  ;;  %v198_v58 = vunpack.c.3.s8 %v841_v0 }
  0x64   : > { %447 = vst [vmem:[%s898_s25 + $0x148] sm:$0xff] %v383_v48  ;;  %v199_v59 = vunpack.c.3.s8 %v844_v1  ;;  %v385_v60 = vmul.f32 0.003921569, %v321_v52  ;;  %v386_v61 = vmul.f32 0.003921569, %v322_v53  ;;  %v325_v63 = vcvt.s32.f32 %v261_v55 }
  0x65   : > { %v387_v62 = vmul.f32 0.003921569, %v323_v54  ;;  %448 = vst [vmem:[%s898_s25 + $0x150] sm:$0xff] %v384_v56  ;;  %v388_v3 = vmul.f32 0.003921569, %v324_v57  ;;  %v262_v4 = vand.u32 255, %v198_v58  ;;  %v200_v10 = vunpack.c.3.s8 %v847_v2 }
  0x66   : > { %v263_v5 = vand.u32 255, %v199_v59  ;;  %449 = vst [vmem:[%s898_s25 + $0x158] sm:$0xff] %v385_v60  ;;  %450 = vst [vmem:[%s898_s25 + $0x160] sm:$0xff] %v386_v61  ;;  %v389_v11 = vmul.f32 0.003921569, %v325_v63  ;;  %v201_v0 = vunpack.c.3.s8 %v853_v6  ;;  %v202_v1 = vunpack.c.3.s8 %v856_v7 }
  0x67   : > { %451 = vst [vmem:[%s898_s25 + $0x168] sm:$0xff] %v387_v62  ;;  %v203_v12 = vunpack.c.3.s8 %v859_v8  ;;  %452 = vst [vmem:[%s898_s25 + $0x170] sm:$0xff] %v388_v3  ;;  %v326_v16 = vcvt.s32.f32 %v262_v4  ;;  %v264_v18 = vand.u32 255, %v200_v10  ;;  %v204_v19 = vunpack.c.3.s8 %v866_v13 }
  0x68   : > { %v327_v17 = vcvt.s32.f32 %v263_v5  ;;  %453 = vst [vmem:[%s898_s25 + $0x178] sm:$0xff] %v389_v11  ;;  %v265_v2 = vand.u32 255, %v201_v0  ;;  %v266_v20 = vand.u32 255, %v202_v1  ;;  %v205_v22 = vunpack.c.3.s8 %v869_v14 }
  0x69   : > { %v267_v21 = vand.u32 255, %v203_v12  ;;  %v390_v23 = vmul.f32 0.003921569, %v326_v16  ;;  %v328_v25 = vcvt.s32.f32 %v264_v18  ;;  %v268_v7 = vand.u32 255, %v204_v19 }
  0x6a   : > { %v391_v6 = vmul.f32 0.003921569, %v327_v17  ;;  %v329_v8 = vcvt.s32.f32 %v265_v2  ;;  %v330_v26 = vcvt.s32.f32 %v266_v20  ;;  %v269_v28 = vand.u32 255, %v205_v22 }
  0x6b   : > { %v331_v27 = vcvt.s32.f32 %v267_v21  ;;  %454 = vst [vmem:[%s898_s25 + $0x180] sm:$0xff] %v390_v23  ;;  %v392_v13 = vmul.f32 0.003921569, %v328_v25  ;;  %v332_v32 = vcvt.s32.f32 %v268_v7  ;;  %v206_v33 = vunpack.c.3.s8 %v876_v24 }
  0x6c   : > { %455 = vst [vmem:[%s898_s25 + $0x188] sm:$0xff] %v391_v6  ;;  %v207_v14 = vunpack.c.3.s8 %v879_v29  ;;  %v393_v34 = vmul.f32 0.003921569, %v329_v8  ;;  %v394_v35 = vmul.f32 0.003921569, %v330_v26  ;;  %v333_v40 = vcvt.s32.f32 %v269_v28 }
  0x6d   : > { %v395_v39 = vmul.f32 0.003921569, %v331_v27  ;;  %456 = vst [vmem:[%s898_s25 + $0x190] sm:$0xff] %v392_v13  ;;  %v396_v41 = vmul.f32 0.003921569, %v332_v32  ;;  %v270_v42 = vand.u32 255, %v206_v33  ;;  %v208_v15 = vunpack.c.3.s8 %v882_v30 }
  0x6e   : > { %v271_v9 = vand.u32 255, %v207_v14  ;;  %457 = vst [vmem:[%s898_s25 + $0x198] sm:$0xff] %v393_v34  ;;  %458 = vst [vmem:[%s898_s25 + $0x1a0] sm:$0xff] %v394_v35  ;;  %v397_v43 = vmul.f32 0.003921569, %v333_v40  ;;  %v209_v24 = vunpack.c.3.s8 %v885_v31  ;;  %v210_v29 = vunpack.c.3.s8 %v888_v36 }
  0x6f   : > { %459 = vst [vmem:[%s898_s25 + $0x1a8] sm:$0xff] %v395_v39  ;;  %v211_v44 = vunpack.c.3.s8 %v891_v37  ;;  %460 = vst [vmem:[%s898_s25 + $0x1b0] sm:$0xff] %v396_v41  ;;  %v334_v45 = vcvt.s32.f32 %v270_v42  ;;  %v272_v47 = vand.u32 255, %v208_v15  ;;  %v212_v48 = vunpack.c.3.s8 %v894_v38 }
  0x70   : > { %v335_v46 = vcvt.s32.f32 %v271_v9  ;;  %461 = vst [vmem:[%s898_s25 + $0x1b8] sm:$0xff] %v397_v43  ;;  %v273_v30 = vand.u32 255, %v209_v24  ;;  %v274_v49 = vand.u32 255, %v210_v29  ;;  %v213_v31 = vunpack.c.3.s8 %v907_v51 }
  0x71   : > { %v275_v50 = vand.u32 255, %v211_v44  ;;  %v398_v52 = vmul.f32 0.003921569, %v334_v45  ;;  %v336_v53 = vcvt.s32.f32 %v272_v47  ;;  %v276_v37 = vand.u32 255, %v212_v48 }
  0x72   : > { %v399_v36 = vmul.f32 0.003921569, %v335_v46  ;;  %v337_v54 = vcvt.s32.f32 %v273_v30  ;;  %v338_v55 = vcvt.s32.f32 %v274_v49  ;;  %v277_v57 = vand.u32 255, %v213_v31 }
  0x73   : > { %v339_v56 = vcvt.s32.f32 %v275_v50  ;;  %462 = vst [vmem:[%s898_s25 + $0x1c0] sm:$0xff] %v398_v52  ;;  %v400_v38 = vmul.f32 0.003921569, %v336_v53  ;;  %v340_v51 = vcvt.s32.f32 %v276_v37 }
  0x74   : > { %463 = vst [vmem:[%s898_s25 + $0x1c8] sm:$0xff] %v399_v36  ;;  %v401_v58 = vmul.f32 0.003921569, %v337_v54  ;;  %v402_v59 = vmul.f32 0.003921569, %v338_v55  ;;  %v341_v61 = vcvt.s32.f32 %v277_v57 }
  0x75   : > { %v403_v60 = vmul.f32 0.003921569, %v339_v56  ;;  %464 = vst [vmem:[%s898_s25 + $0x1d0] sm:$0xff] %v400_v38  ;;  %v404_v62 = vmul.f32 0.003921569, %v340_v51 }
  0x76   : > { %465 = vst [vmem:[%s898_s25 + $0x1d8] sm:$0xff] %v401_v58  ;;  %466 = vst [vmem:[%s898_s25 + $0x1e0] sm:$0xff] %v402_v59  ;;  %v405_v63 = vmul.f32 0.003921569, %v341_v61 }
  0x77   : > { %467 = vst [vmem:[%s898_s25 + $0x1e8] sm:$0xff] %v403_v60  ;;  %468 = vst [vmem:[%s898_s25 + $0x1f0] sm:$0xff] %v404_v62 }
  0x78   : > { %469 = vst [vmem:[%s898_s25 + $0x1f8] sm:$0xff] %v405_v63 }
  0x79   : > { %665 = shalt.err (!%p662_p10)
}
  0x7a   : > { %s666_s11 = scalar_lea.hbm %s1025_s10, 8192  ;;  %s670_s16 = scalar_lea.hbm %s1076_s1, 16384 }
  0x7b   : > { %p667_p2 = scmp.ne.s32.totalorder %s1025_s10, %s666_s11  ;;  %p671_p7 = scmp.lt.s32.totalorder %s1025_s10, %s1076_s1 }
  0x7c   : > { %p672_p0 = scmp.lt.s32.totalorder %s670_s16, %s666_s11 }
  0x7d   : > { %p668_p4 = pnand %p667_p2, %p1087_p12 }
  0x7e   : > { %p673_p6 = por %p672_p0, %p671_p7 }
  0x7f   : > { %p669_p9 = pneg %p668_p4 }
  0x81   : > { %p674_p11 = pnand %p673_p6, %p669_p9 }
  0x83   : > { %677 = shalt.err (!%p674_p11)
}
  0x84   : > { %s720_s23 = smov 2048   ;;  %s721_s24 = smov 128  }
  0x85   : > { %578 = dma.vmem_to_hbm [thread:$0]  (%p1087_p12), %s1027_s27, 8192, %s1025_s10, %s471_s30, %s720_s23, %s720_s23, %s721_s24  }
  0x86 PF: > { %s500_s17 = sand.u32 1, %s704_s6   ;;  %p1088_p13 = scmp.ne.s32.totalorder %s1082_s19, 0 }
  0x87   : > { %p1089_p1 = scmp.ge.s32.totalorder %s716_s9, 2  ;;  %s501_s25 = scalar_lea.sflag [#allocation4], %s500_s17 }
  0x89   : > { %p585_p3 = pnand %p1089_p1, %p1088_p13 }
  0x8b   : > { %p586_p5 = pneg %p585_p3 }
  0x8d   : > { %699 = dma.done.wait (%p586_p5), %s501_s25, 8192  }
  0x8e   : > { %701 = vsyncadd (%p586_p5), %s501_s25, 4294959104  ;;  %p14_p8 = scmp.ge.s32.totalorder %s757_s12, 4   ;;  %s1090_s6 = smov %s708_s7 }
  0x8f   : > { %s1091_s7 = smov %s712_s8  ;;  %s1092_s8 = smov %s769_s15 }
  0x90   : > { %s1093_s9 = smov %s757_s12  ;;  %16 = sbr.rel (!%p14_p8) target bundleno = 5 (0x5), region = 69 }
  0x95   :  { %506 = vsyncpa [#allocation3], 1 }
  0x96   :  { %508 = vsyncpa [#allocation3 + $0x1], 1 }
  0x97   :  { %509 = vsyncpa [#allocation4], 1 }
  0x98   :  { %511 = vsyncpa [#allocation4 + $0x1], 1 }

</bundles_post_ra>
